<compile_context>
chip_gen: v7x
topology: tpu7x:2x2x1
jax: 0.10.0
libtpu: 0.0.40
codegen_flags: <defaults>
</compile_context>

<pallas_src>
import functools
import math

import jax
import jax.numpy as jnp
from jax.experimental import pallas as pl
from jax.experimental.pallas import tpu as pltpu

LN_EPS = 1e-5
NEG_INF = -1e30


def _round_up(x, m):
    return ((x + m - 1) // m) * m


def _pad2d(x, rows, cols):
    r, c = x.shape
    return jnp.pad(x, ((0, rows - r), (0, cols - c)))


def _gelu_tanh(x):
    # TODO(synk): torch.nn.GELU() default is the exact erf form; tanh approximation used here.
    return 0.5 * x * (1.0 + jnp.tanh(0.7978845608028654 * (x + 0.044715 * x * x * x)))


# ------------------------ kernel 1: fused QKV + multi-head attention ------------------------
def mha_kernel(x_ref, wqkv_ref, bqkv_ref, mask_ref, o_ref, *, num_heads, head_dim, scale):
    x = x_ref[0]                                                        # (S, E)
    qkv = jnp.dot(x, wqkv_ref[...], preferred_element_type=jnp.float32) + bqkv_ref[...]
    E = num_heads * head_dim
    add_mask = mask_ref[0]                                              # (1, S): 0 real / -1e30 padded key
    outs = []
    for h in range(num_heads):
        lo = h * head_dim
        q = qkv[:, lo:lo + head_dim]
        k = qkv[:, E + lo:E + lo + head_dim]
        v = qkv[:, 2 * E + lo:2 * E + lo + head_dim]
        s = jax.lax.dot_general(q, k, (((1,), (1,)), ((), ())),
                                preferred_element_type=jnp.float32) * scale
        s = s + add_mask                                                # broadcast over query rows
        m = jnp.max(s, axis=-1, keepdims=True)
        p = jnp.exp(s - m)
        p = p / jnp.sum(p, axis=-1, keepdims=True)
        # TODO(synk): attention-weight Dropout(0.1) skipped (module assumed in eval mode).
        outs.append(jnp.dot(p, v, preferred_element_type=jnp.float32))
    o_ref[0] = jnp.concatenate(outs, axis=-1).astype(o_ref.dtype)


# -------------------- kernel 2: out-projection + residual + LayerNorm1 --------------------
def proj_add_ln_kernel(attn_ref, res_ref, w_ref, b_ref, g_ref, bt_ref, o_ref, *, true_dim):
    h = jnp.dot(attn_ref[...], w_ref[...], preferred_element_type=jnp.float32)
    h = h + b_ref[...] + res_ref[...]            # residual add; Dropout(0.1) -> identity (eval)
    inv_n = 1.0 / true_dim                       # normalize over the REAL feature count
    mean = jnp.sum(h, axis=-1, keepdims=True) * inv_n
    msq = jnp.sum(h * h, axis=-1, keepdims=True) * inv_n
    var = msq - mean * mean
    y = (h - mean) * jax.lax.rsqrt(var + LN_EPS)
    o_ref[...] = (y * g_ref[...] + bt_ref[...]).astype(o_ref.dtype)


# -------------- kernel 3: FFN (Linear / GELU / Linear) + residual + LayerNorm2 --------------
def ffn_add_ln_kernel(x_ref, w1_ref, b1_ref, w2_ref, b2_ref, g_ref, bt_ref, o_ref, *, true_dim):
    x = x_ref[...]
    # TODO(synk): on v5e/v6e, casting x/w1/w2 to bf16 at the MXU inputs would halve HBM traffic.
    h = jnp.dot(x, w1_ref[...], preferred_element_type=jnp.float32) + b1_ref[...]
    h = _gelu_tanh(h)
    ff = jnp.dot(h, w2_ref[...], preferred_element_type=jnp.float32) + b2_ref[...]
    z = ff + x                                   # residual add; Dropout(0.1) -> identity (eval)
    inv_n = 1.0 / true_dim
    mean = jnp.sum(z, axis=-1, keepdims=True) * inv_n
    msq = jnp.sum(z * z, axis=-1, keepdims=True) * inv_n
    var = msq - mean * mean
    y = (z - mean) * jax.lax.rsqrt(var + LN_EPS)
    o_ref[...] = (y * g_ref[...] + bt_ref[...]).astype(o_ref.dtype)


@functools.partial(jax.jit, static_argnames=("num_heads",))
def encoder_forward(word_vec, pad_mask, params, *, num_heads):
    B, S, E = word_vec.shape
    hidden = params["w1_t"].shape[1]
    head_dim = E // num_heads
    f32 = jnp.float32
    wv = word_vec.astype(f32)

    # ---- 1) multi-head self-attention (grid over batch, "parallel") ----
    add_mask = jnp.where(pad_mask, NEG_INF, 0.0).astype(f32).reshape(B, 1, S)
    attn = pl.pallas_call(
        functools.partial(mha_kernel, num_heads=num_heads, head_dim=head_dim,
                          scale=1.0 / math.sqrt(head_dim)),
        out_shape=jax.ShapeDtypeStruct((B, S, E), f32),
        grid=(B,),
        in_specs=[
            pl.BlockSpec((1, S, E), lambda b: (b, 0, 0)),
            pl.BlockSpec((E, 3 * E), lambda b: (0, 0)),
            pl.BlockSpec((1, 3 * E), lambda b: (0, 0)),
            pl.BlockSpec((1, 1, S), lambda b: (b, 0, 0)),
        ],
        out_specs=pl.BlockSpec((1, S, E), lambda b: (b, 0, 0)),
        compiler_params=pltpu.CompilerParams(dimension_semantics=("parallel",)),
    )(wv, params["w_qkv_t"], params["b_qkv"], add_mask)

    # ---- row tiling + lane-dense (128-multiple) feature padding for the streaming kernels ----
    M = B * S
    E_pad = _round_up(E, 128)
    H_pad = _round_up(hidden, 128)
    TM = min(512, _round_up(M, 8))          # big row blocks amortize per-grid-step overhead
    M_pad = _round_up(M, TM)
    grid_m = M_pad // TM

    attn2d = _pad2d(attn.reshape(M, E), M_pad, E_pad)
    resid2d = _pad2d(wv.reshape(M, E), M_pad, E_pad)
    w_out = _pad2d(params["w_out_t"], E_pad, E_pad)
    b_out = _pad2d(params["b_out"], 1, E_pad)
    g1 = _pad2d(params["g1"], 1, E_pad)
    bt1 = _pad2d(params["bt1"], 1, E_pad)
    w1 = _pad2d(params["w1_t"], E_pad, H_pad)
    b1 = _pad2d(params["b1"], 1, H_pad)
    w2 = _pad2d(params["w2_t"], H_pad, E_pad)
    b2 = _pad2d(params["b2"], 1, E_pad)
    g2 = _pad2d(params["g2"], 1, E_pad)
    bt2 = _pad2d(params["bt2"], 1, E_pad)

    row_spec = pl.BlockSpec((TM, E_pad), lambda i: (i, 0))       # streamed activations
    full = lambda shape: pl.BlockSpec(shape, lambda i: (0, 0))   # VMEM-resident weights

    # ---- 2) out-projection + residual + LayerNorm1 ----
    o = pl.pallas_call(
        functools.partial(proj_add_ln_kernel, true_dim=E),
        out_shape=jax.ShapeDtypeStruct((M_pad, E_pad), f32),
        grid=(grid_m,),
        in_specs=[row_spec, row_spec, full((E_pad, E_pad)), full((1, E_pad)),
                  full((1, E_pad)), full((1, E_pad))],
        out_specs=row_spec,
        compiler_params=pltpu.CompilerParams(dimension_semantics=("parallel",)),
        cost_estimate=pl.CostEstimate(
            flops=2 * M_pad * E_pad * E_pad,
            transcendentals=M_pad,
            bytes_accessed=4 * (3 * M_pad * E_pad + E_pad * E_pad + 4 * E_pad)),
    )(attn2d, resid2d, w_out, b_out, g1, bt1)

    # ---- 3) FFN + residual + LayerNorm2 ----
    o2 = pl.pallas_call(
        functools.partial(ffn_add_ln_kernel, true_dim=E),
        out_shape=jax.ShapeDtypeStruct((M_pad, E_pad), f32),
        grid=(grid_m,),
        in_specs=[row_spec, full((E_pad, H_pad)), full((1, H_pad)),
                  full((H_pad, E_pad)), full((1, E_pad)),
                  full((1, E_pad)), full((1, E_pad))],
        out_specs=row_spec,
        compiler_params=pltpu.CompilerParams(dimension_semantics=("parallel",)),
        cost_estimate=pl.CostEstimate(
            flops=2 * M_pad * (E_pad * H_pad + H_pad * E_pad),
            transcendentals=M_pad * H_pad + M_pad,
            bytes_accessed=4 * (2 * M_pad * E_pad + 2 * E_pad * H_pad + H_pad + 3 * E_pad)),
    )(o, w1, b1, w2, b2, g2, bt2)

    return o2[:M, :E].reshape(B, S, E)


# ---------------------------------- pure-JAX reference ----------------------------------
def _layer_norm_ref(x, g, b):
    mean = jnp.mean(x, axis=-1, keepdims=True)
    var = jnp.mean(jnp.square(x - mean), axis=-1, keepdims=True)
    return (x - mean) * jax.lax.rsqrt(var + LN_EPS) * g + b


def encoder_ref(word_vec, pad_mask, params, num_heads):
    B, S, E = word_vec.shape
    D = E // num_heads
    hp = jax.lax.Precision.HIGHEST
    x = word_vec.astype(jnp.float32)

    qkv = jnp.einsum("bse,ef->bsf", x, params["w_qkv_t"], precision=hp) + params["b_qkv"][0]
    q, k, v = jnp.split(qkv, 3, axis=-1)
    split = lambda t: t.reshape(B, S, num_heads, D).transpose(0, 2, 1, 3)
    q, k, v = split(q), split(k), split(v)
    s = jnp.einsum("bhqd,bhkd->bhqk", q, k, precision=hp) / math.sqrt(D)
    s = s + jnp.where(pad_mask, NEG_INF, 0.0)[:, None, None, :]
    p = jax.nn.softmax(s, axis=-1)
    ctx = jnp.einsum("bhqk,bhkd->bhqd", p, v, precision=hp)
    ctx = ctx.transpose(0, 2, 1, 3).reshape(B, S, E)
    attn = jnp.einsum("bse,ef->bsf", ctx, params["w_out_t"], precision=hp) + params["b_out"][0]

    o = _layer_norm_ref(attn + x, params["g1"][0], params["bt1"][0])
    h = _gelu_tanh(jnp.einsum("bse,eh->bsh", o, params["w1_t"], precision=hp) + params["b1"][0])
    ff = jnp.einsum("bsh,he->bse", h, params["w2_t"], precision=hp) + params["b2"][0]
    return _layer_norm_ref(ff + o, params["g2"][0], params["bt2"][0])


def init_params(key, E, hidden):
    ks = jax.random.split(key, 12)

    def u(k, shape, fan_in):
        bound = 1.0 / math.sqrt(fan_in)
        return jax.random.uniform(k, shape, jnp.float32, -bound, bound)

    return dict(
        # weights stored transposed relative to torch.nn layouts (right-multiply form)
        w_qkv_t=u(ks[0], (E, 3 * E), E),
        b_qkv=u(ks[1], (1, 3 * E), E),
        w_out_t=u(ks[2], (E, E), E),
        b_out=u(ks[3], (1, E), E),
        g1=1.0 + 0.1 * jax.random.normal(ks[4], (1, E), jnp.float32),
        bt1=0.1 * jax.random.normal(ks[5], (1, E), jnp.float32),
        w1_t=u(ks[6], (E, hidden), E),
        b1=u(ks[7], (1, hidden), E),
        w2_t=u(ks[8], (hidden, E), hidden),
        b2=u(ks[9], (1, E), hidden),
        g2=1.0 + 0.1 * jax.random.normal(ks[10], (1, E), jnp.float32),
        bt2=0.1 * jax.random.normal(ks[11], (1, E), jnp.float32),
    )


if __name__ == "__main__":
    batch, seq = 2, 8
    embedding_dim, hidden_size, num_head = 32, 64, 4

    key = jax.random.PRNGKey(0)
    kx, kp = jax.random.split(key)

    word_vec = jax.random.normal(kx, (batch, seq, embedding_dim), jnp.float32)
    lengths = jnp.array([seq, 5])
    pad = jnp.arange(seq)[None, :] >= lengths[:, None]       # True = padded key position

    params = init_params(kp, embedding_dim, hidden_size)

    out = encoder_forward(word_vec, pad, params, num_heads=num_head)
    jax.block_until_ready(out)

    ref = encoder_ref(word_vec, pad, params, num_head)
    err = float(jnp.max(jnp.abs(out - ref)))
    assert out.shape == (batch, seq, embedding_dim)
    assert jnp.allclose(out, ref, atol=2e-3, rtol=2e-3), f"max abs err {err}"

    print("KERNEL_OK")
</pallas_src>

<mosaic_0001>
module attributes {stable_mosaic.version = 11 : i64} {
  func.func @mha_kernel(%arg0: i32, %arg1: memref<1x8x32xf32, #tpu.memory_space<vmem>>, %arg2: memref<32x96xf32, #tpu.memory_space<vmem>>, %arg3: memref<1x96xf32, #tpu.memory_space<vmem>>, %arg4: memref<1x1x8xf32, #tpu.memory_space<vmem>>, %arg5: memref<1x8x32xf32, #tpu.memory_space<vmem>>) attributes {dimension_semantics = [#tpu.dimension_semantics<parallel>], iteration_bounds = array<i64: 2>, scalar_prefetch = 0 : i64, scratch_operands = 0 : i64, tpu.core_type = #tpu.core_type<tc>, window_params = [{transform_indices = @transform_0, window_bounds = array<i64: 1, 8, 32>}, {pipeline_mode = #tpu.pipeline_mode<synchronous>, transform_indices = @transform_1, window_bounds = array<i64: 32, 96>}, {pipeline_mode = #tpu.pipeline_mode<synchronous>, transform_indices = @transform_2, window_bounds = array<i64: 1, 96>}, {transform_indices = @transform_3, window_bounds = array<i64: 1, 1, 8>}, {transform_indices = @transform_4, window_bounds = array<i64: 1, 8, 32>}]} {
    %c0 = arith.constant 0 : index
    %c0_0 = arith.constant 0 : index
    %c0_1 = arith.constant 0 : index
    %0 = vector.load %arg1[%c0, %c0_0, %c0_1] : memref<1x8x32xf32, #tpu.memory_space<vmem>>, vector<1x8x32xf32>
    %1 = vector.shape_cast %0 : vector<1x8x32xf32> to vector<8x32xf32>
    %c0_2 = arith.constant 0 : index
    %c0_3 = arith.constant 0 : index
    %2 = vector.load %arg2[%c0_2, %c0_3] : memref<32x96xf32, #tpu.memory_space<vmem>>, vector<32x96xf32>
    %cst = arith.constant dense<0.000000e+00> : vector<8x96xf32>
    %3 = tpu.matmul %1, %2, %cst {dimension_numbers = #tpu.dot_dimension_numbers<[1], [0], [0], [1], [0, 0, 1, 1], [], []>} : vector<8x32xf32>, vector<32x96xf32>, vector<8x96xf32> -> vector<8x96xf32>
    %c0_4 = arith.constant 0 : index
    %c0_5 = arith.constant 0 : index
    %4 = vector.load %arg3[%c0_4, %c0_5] : memref<1x96xf32, #tpu.memory_space<vmem>>, vector<1x96xf32>
    %5 = vector.broadcast %4 : vector<1x96xf32> to vector<8x96xf32>
    %6 = arith.addf %3, %5 : vector<8x96xf32>
    %c0_6 = arith.constant 0 : index
    %c0_7 = arith.constant 0 : index
    %c0_8 = arith.constant 0 : index
    %7 = vector.load %arg4[%c0_6, %c0_7, %c0_8] : memref<1x1x8xf32, #tpu.memory_space<vmem>>, vector<1x1x8xf32>
    %8 = vector.shape_cast %7 : vector<1x1x8xf32> to vector<1x8xf32>
    %9 = vector.extract_strided_slice %6 {offsets = [0, 0], sizes = [8, 8], strides = [1, 1]} : vector<8x96xf32> to vector<8x8xf32>
    %10 = vector.extract_strided_slice %6 {offsets = [0, 32], sizes = [8, 8], strides = [1, 1]} : vector<8x96xf32> to vector<8x8xf32>
    %11 = vector.extract_strided_slice %6 {offsets = [0, 64], sizes = [8, 8], strides = [1, 1]} : vector<8x96xf32> to vector<8x8xf32>
    %cst_9 = arith.constant dense<0.000000e+00> : vector<8x8xf32>
    %12 = tpu.matmul %9, %10, %cst_9 {dimension_numbers = #tpu.dot_dimension_numbers<[1], [1], [0], [0], [0, 0, 1, 0], [], []>} : vector<8x8xf32>, vector<8x8xf32>, vector<8x8xf32> -> vector<8x8xf32>
    %cst_10 = arith.constant 0.353553385 : f32
    %13 = vector.broadcast %cst_10 : f32 to vector<8x8xf32>
    %14 = arith.mulf %12, %13 : vector<8x8xf32>
    %15 = vector.broadcast %8 : vector<1x8xf32> to vector<8x8xf32>
    %16 = arith.addf %14, %15 : vector<8x8xf32>
    %cst_11 = arith.constant dense<0xFF800000> : vector<8xf32>
    %17 = vector.multi_reduction <maximumf>, %16, %cst_11 [1] : vector<8x8xf32> to vector<8xf32>
    %18 = vector.shape_cast %17 : vector<8xf32> to vector<8x1xf32>
    %19 = vector.broadcast %18 : vector<8x1xf32> to vector<8x8xf32>
    %20 = arith.subf %16, %19 : vector<8x8xf32>
    %21 = math.exp %20 : vector<8x8xf32>
    %cst_12 = arith.constant dense<0.000000e+00> : vector<8xf32>
    %22 = vector.multi_reduction <add>, %21, %cst_12 [1] : vector<8x8xf32> to vector<8xf32>
    %23 = vector.shape_cast %22 : vector<8xf32> to vector<8x1xf32>
    %24 = vector.broadcast %23 : vector<8x1xf32> to vector<8x8xf32>
    %25 = arith.divf %21, %24 : vector<8x8xf32>
    %cst_13 = arith.constant dense<0.000000e+00> : vector<8x8xf32>
    %26 = tpu.matmul %25, %11, %cst_13 {dimension_numbers = #tpu.dot_dimension_numbers<[1], [0], [0], [1], [0, 0, 1, 1], [], []>} : vector<8x8xf32>, vector<8x8xf32>, vector<8x8xf32> -> vector<8x8xf32>
    %27 = vector.extract_strided_slice %6 {offsets = [0, 8], sizes = [8, 8], strides = [1, 1]} : vector<8x96xf32> to vector<8x8xf32>
    %28 = vector.extract_strided_slice %6 {offsets = [0, 40], sizes = [8, 8], strides = [1, 1]} : vector<8x96xf32> to vector<8x8xf32>
    %29 = vector.extract_strided_slice %6 {offsets = [0, 72], sizes = [8, 8], strides = [1, 1]} : vector<8x96xf32> to vector<8x8xf32>
    %cst_14 = arith.constant dense<0.000000e+00> : vector<8x8xf32>
    %30 = tpu.matmul %27, %28, %cst_14 {dimension_numbers = #tpu.dot_dimension_numbers<[1], [1], [0], [0], [0, 0, 1, 0], [], []>} : vector<8x8xf32>, vector<8x8xf32>, vector<8x8xf32> -> vector<8x8xf32>
    %cst_15 = arith.constant 0.353553385 : f32
    %31 = vector.broadcast %cst_15 : f32 to vector<8x8xf32>
    %32 = arith.mulf %30, %31 : vector<8x8xf32>
    %33 = vector.broadcast %8 : vector<1x8xf32> to vector<8x8xf32>
    %34 = arith.addf %32, %33 : vector<8x8xf32>
    %cst_16 = arith.constant dense<0xFF800000> : vector<8xf32>
    %35 = vector.multi_reduction <maximumf>, %34, %cst_16 [1] : vector<8x8xf32> to vector<8xf32>
    %36 = vector.shape_cast %35 : vector<8xf32> to vector<8x1xf32>
    %37 = vector.broadcast %36 : vector<8x1xf32> to vector<8x8xf32>
    %38 = arith.subf %34, %37 : vector<8x8xf32>
    %39 = math.exp %38 : vector<8x8xf32>
    %cst_17 = arith.constant dense<0.000000e+00> : vector<8xf32>
    %40 = vector.multi_reduction <add>, %39, %cst_17 [1] : vector<8x8xf32> to vector<8xf32>
    %41 = vector.shape_cast %40 : vector<8xf32> to vector<8x1xf32>
    %42 = vector.broadcast %41 : vector<8x1xf32> to vector<8x8xf32>
    %43 = arith.divf %39, %42 : vector<8x8xf32>
    %cst_18 = arith.constant dense<0.000000e+00> : vector<8x8xf32>
    %44 = tpu.matmul %43, %29, %cst_18 {dimension_numbers = #tpu.dot_dimension_numbers<[1], [0], [0], [1], [0, 0, 1, 1], [], []>} : vector<8x8xf32>, vector<8x8xf32>, vector<8x8xf32> -> vector<8x8xf32>
    %45 = vector.extract_strided_slice %6 {offsets = [0, 16], sizes = [8, 8], strides = [1, 1]} : vector<8x96xf32> to vector<8x8xf32>
    %46 = vector.extract_strided_slice %6 {offsets = [0, 48], sizes = [8, 8], strides = [1, 1]} : vector<8x96xf32> to vector<8x8xf32>
    %47 = vector.extract_strided_slice %6 {offsets = [0, 80], sizes = [8, 8], strides = [1, 1]} : vector<8x96xf32> to vector<8x8xf32>
    %cst_19 = arith.constant dense<0.000000e+00> : vector<8x8xf32>
    %48 = tpu.matmul %45, %46, %cst_19 {dimension_numbers = #tpu.dot_dimension_numbers<[1], [1], [0], [0], [0, 0, 1, 0], [], []>} : vector<8x8xf32>, vector<8x8xf32>, vector<8x8xf32> -> vector<8x8xf32>
    %cst_20 = arith.constant 0.353553385 : f32
    %49 = vector.broadcast %cst_20 : f32 to vector<8x8xf32>
    %50 = arith.mulf %48, %49 : vector<8x8xf32>
    %51 = vector.broadcast %8 : vector<1x8xf32> to vector<8x8xf32>
    %52 = arith.addf %50, %51 : vector<8x8xf32>
    %cst_21 = arith.constant dense<0xFF800000> : vector<8xf32>
    %53 = vector.multi_reduction <maximumf>, %52, %cst_21 [1] : vector<8x8xf32> to vector<8xf32>
    %54 = vector.shape_cast %53 : vector<8xf32> to vector<8x1xf32>
    %55 = vector.broadcast %54 : vector<8x1xf32> to vector<8x8xf32>
    %56 = arith.subf %52, %55 : vector<8x8xf32>
    %57 = math.exp %56 : vector<8x8xf32>
    %cst_22 = arith.constant dense<0.000000e+00> : vector<8xf32>
    %58 = vector.multi_reduction <add>, %57, %cst_22 [1] : vector<8x8xf32> to vector<8xf32>
    %59 = vector.shape_cast %58 : vector<8xf32> to vector<8x1xf32>
    %60 = vector.broadcast %59 : vector<8x1xf32> to vector<8x8xf32>
    %61 = arith.divf %57, %60 : vector<8x8xf32>
    %cst_23 = arith.constant dense<0.000000e+00> : vector<8x8xf32>
    %62 = tpu.matmul %61, %47, %cst_23 {dimension_numbers = #tpu.dot_dimension_numbers<[1], [0], [0], [1], [0, 0, 1, 1], [], []>} : vector<8x8xf32>, vector<8x8xf32>, vector<8x8xf32> -> vector<8x8xf32>
    %63 = vector.extract_strided_slice %6 {offsets = [0, 24], sizes = [8, 8], strides = [1, 1]} : vector<8x96xf32> to vector<8x8xf32>
    %64 = vector.extract_strided_slice %6 {offsets = [0, 56], sizes = [8, 8], strides = [1, 1]} : vector<8x96xf32> to vector<8x8xf32>
    %65 = vector.extract_strided_slice %6 {offsets = [0, 88], sizes = [8, 8], strides = [1, 1]} : vector<8x96xf32> to vector<8x8xf32>
    %cst_24 = arith.constant dense<0.000000e+00> : vector<8x8xf32>
    %66 = tpu.matmul %63, %64, %cst_24 {dimension_numbers = #tpu.dot_dimension_numbers<[1], [1], [0], [0], [0, 0, 1, 0], [], []>} : vector<8x8xf32>, vector<8x8xf32>, vector<8x8xf32> -> vector<8x8xf32>
    %cst_25 = arith.constant 0.353553385 : f32
    %67 = vector.broadcast %cst_25 : f32 to vector<8x8xf32>
    %68 = arith.mulf %66, %67 : vector<8x8xf32>
    %69 = vector.broadcast %8 : vector<1x8xf32> to vector<8x8xf32>
    %70 = arith.addf %68, %69 : vector<8x8xf32>
    %cst_26 = arith.constant dense<0xFF800000> : vector<8xf32>
    %71 = vector.multi_reduction <maximumf>, %70, %cst_26 [1] : vector<8x8xf32> to vector<8xf32>
    %72 = vector.shape_cast %71 : vector<8xf32> to vector<8x1xf32>
    %73 = vector.broadcast %72 : vector<8x1xf32> to vector<8x8xf32>
    %74 = arith.subf %70, %73 : vector<8x8xf32>
    %75 = math.exp %74 : vector<8x8xf32>
    %cst_27 = arith.constant dense<0.000000e+00> : vector<8xf32>
    %76 = vector.multi_reduction <add>, %75, %cst_27 [1] : vector<8x8xf32> to vector<8xf32>
    %77 = vector.shape_cast %76 : vector<8xf32> to vector<8x1xf32>
    %78 = vector.broadcast %77 : vector<8x1xf32> to vector<8x8xf32>
    %79 = arith.divf %75, %78 : vector<8x8xf32>
    %cst_28 = arith.constant dense<0.000000e+00> : vector<8x8xf32>
    %80 = tpu.matmul %79, %65, %cst_28 {dimension_numbers = #tpu.dot_dimension_numbers<[1], [0], [0], [1], [0, 0, 1, 1], [], []>} : vector<8x8xf32>, vector<8x8xf32>, vector<8x8xf32> -> vector<8x8xf32>
    %81 = tpu.concatenate %26, %44, %62, %80 in 1 : vector<8x8xf32>, vector<8x8xf32>, vector<8x8xf32>, vector<8x8xf32> -> vector<8x32xf32>
    %c0_29 = arith.constant 0 : index
    %c0_30 = arith.constant 0 : index
    %c0_31 = arith.constant 0 : index
    %82 = vector.load %arg5[%c0_29, %c0_30, %c0_31] : memref<1x8x32xf32, #tpu.memory_space<vmem>>, vector<1x8x32xf32>
    %83 = vector.shape_cast %82 : vector<1x8x32xf32> to vector<8x32xf32>
    %84 = vector.shape_cast %81 : vector<8x32xf32> to vector<1x8x32xf32>
    tpu.vector_store %arg5[%c0_29, %c0_30, %c0_31], %84 {strides = array<i32>} : memref<1x8x32xf32, #tpu.memory_space<vmem>>, vector<1x8x32xf32>,
    return
  }
  func.func @transform_0(%arg0: i32) -> (i32, i32, i32) {
    %c0_i32 = arith.constant 0 : i32
    %c0_i32_0 = arith.constant 0 : i32
    %c0_i32_1 = arith.constant 0 : i32
    return %arg0, %c0_i32, %c0_i32_0 : i32, i32, i32
  }
  func.func @transform_1(%arg0: i32) -> (i32, i32) {
    %c0_i32 = arith.constant 0 : i32
    %c0_i32_0 = arith.constant 0 : i32
    %c0_i32_1 = arith.constant 0 : i32
    return %c0_i32, %c0_i32_0 : i32, i32
  }
  func.func @transform_2(%arg0: i32) -> (i32, i32) {
    %c0_i32 = arith.constant 0 : i32
    %c0_i32_0 = arith.constant 0 : i32
    %c0_i32_1 = arith.constant 0 : i32
    return %c0_i32, %c0_i32_0 : i32, i32
  }
  func.func @transform_3(%arg0: i32) -> (i32, i32, i32) {
    %c0_i32 = arith.constant 0 : i32
    %c0_i32_0 = arith.constant 0 : i32
    %c0_i32_1 = arith.constant 0 : i32
    return %arg0, %c0_i32, %c0_i32_0 : i32, i32, i32
  }
  func.func @transform_4(%arg0: i32) -> (i32, i32, i32) {
    %c0_i32 = arith.constant 0 : i32
    %c0_i32_0 = arith.constant 0 : i32
    %c0_i32_1 = arith.constant 0 : i32
    return %arg0, %c0_i32, %c0_i32_0 : i32, i32, i32
  }
}

module attributes {stable_mosaic.version = 11 : i64} {
  func.func @proj_add_ln_kernel(%arg0: i32, %arg1: memref<16x128xf32, #tpu.memory_space<vmem>>, %arg2: memref<16x128xf32, #tpu.memory_space<vmem>>, %arg3: memref<128x128xf32, #tpu.memory_space<vmem>>, %arg4: memref<1x128xf32, #tpu.memory_space<vmem>>, %arg5: memref<1x128xf32, #tpu.memory_space<vmem>>, %arg6: memref<1x128xf32, #tpu.memory_space<vmem>>, %arg7: memref<16x128xf32, #tpu.memory_space<vmem>>) attributes {dimension_semantics = [#tpu.dimension_semantics<parallel>], iteration_bounds = array<i64: 1>, scalar_prefetch = 0 : i64, scratch_operands = 0 : i64, tpu.core_type = #tpu.core_type<tc>, window_params = [{transform_indices = @transform_0, window_bounds = array<i64: 16, 128>}, {transform_indices = @transform_1, window_bounds = array<i64: 16, 128>}, {pipeline_mode = #tpu.pipeline_mode<synchronous>, transform_indices = @transform_2, window_bounds = array<i64: 128, 128>}, {pipeline_mode = #tpu.pipeline_mode<synchronous>, transform_indices = @transform_3, window_bounds = array<i64: 1, 128>}, {pipeline_mode = #tpu.pipeline_mode<synchronous>, transform_indices = @transform_4, window_bounds = array<i64: 1, 128>}, {pipeline_mode = #tpu.pipeline_mode<synchronous>, transform_indices = @transform_5, window_bounds = array<i64: 1, 128>}, {transform_indices = @transform_6, window_bounds = array<i64: 16, 128>}]} {
    %c0 = arith.constant 0 : index
    %c0_0 = arith.constant 0 : index
    %0 = vector.load %arg1[%c0, %c0_0] : memref<16x128xf32, #tpu.memory_space<vmem>>, vector<16x128xf32>
    %c0_1 = arith.constant 0 : index
    %c0_2 = arith.constant 0 : index
    %1 = vector.load %arg3[%c0_1, %c0_2] : memref<128x128xf32, #tpu.memory_space<vmem>>, vector<128x128xf32>
    %cst = arith.constant dense<0.000000e+00> : vector<16x128xf32>
    %2 = tpu.matmul %0, %1, %cst {dimension_numbers = #tpu.dot_dimension_numbers<[1], [0], [0], [1], [0, 0, 1, 1], [], []>} : vector<16x128xf32>, vector<128x128xf32>, vector<16x128xf32> -> vector<16x128xf32>
    %c0_3 = arith.constant 0 : index
    %c0_4 = arith.constant 0 : index
    %3 = vector.load %arg4[%c0_3, %c0_4] : memref<1x128xf32, #tpu.memory_space<vmem>>, vector<1x128xf32>
    %4 = vector.broadcast %3 : vector<1x128xf32> to vector<16x128xf32>
    %5 = arith.addf %2, %4 : vector<16x128xf32>
    %c0_5 = arith.constant 0 : index
    %c0_6 = arith.constant 0 : index
    %6 = vector.load %arg2[%c0_5, %c0_6] : memref<16x128xf32, #tpu.memory_space<vmem>>, vector<16x128xf32>
    %7 = arith.addf %5, %6 : vector<16x128xf32>
    %cst_7 = arith.constant dense<0.000000e+00> : vector<16xf32>
    %8 = vector.multi_reduction <add>, %7, %cst_7 [1] : vector<16x128xf32> to vector<16xf32>
    %9 = vector.shape_cast %8 : vector<16xf32> to vector<16x1xf32>
    %cst_8 = arith.constant 3.125000e-02 : f32
    %10 = vector.broadcast %cst_8 : f32 to vector<16x1xf32>
    %11 = arith.mulf %9, %10 : vector<16x1xf32>
    %12 = arith.mulf %7, %7 : vector<16x128xf32>
    %cst_9 = arith.constant dense<0.000000e+00> : vector<16xf32>
    %13 = vector.multi_reduction <add>, %12, %cst_9 [1] : vector<16x128xf32> to vector<16xf32>
    %14 = vector.shape_cast %13 : vector<16xf32> to vector<16x1xf32>
    %cst_10 = arith.constant 3.125000e-02 : f32
    %15 = vector.broadcast %cst_10 : f32 to vector<16x1xf32>
    %16 = arith.mulf %14, %15 : vector<16x1xf32>
    %17 = arith.mulf %11, %11 : vector<16x1xf32>
    %18 = arith.subf %16, %17 : vector<16x1xf32>
    %19 = vector.broadcast %11 : vector<16x1xf32> to vector<16x128xf32>
    %20 = arith.subf %7, %19 : vector<16x128xf32>
    %cst_11 = arith.constant 9.99999974E-6 : f32
    %21 = vector.broadcast %cst_11 : f32 to vector<16x1xf32>
    %22 = arith.addf %18, %21 : vector<16x1xf32>
    %23 = math.rsqrt %22 : vector<16x1xf32>
    %24 = vector.broadcast %23 : vector<16x1xf32> to vector<16x128xf32>
    %25 = arith.mulf %20, %24 : vector<16x128xf32>
    %c0_12 = arith.constant 0 : index
    %c0_13 = arith.constant 0 : index
    %26 = vector.load %arg5[%c0_12, %c0_13] : memref<1x128xf32, #tpu.memory_space<vmem>>, vector<1x128xf32>
    %27 = vector.broadcast %26 : vector<1x128xf32> to vector<16x128xf32>
    %28 = arith.mulf %25, %27 : vector<16x128xf32>
    %c0_14 = arith.constant 0 : index
    %c0_15 = arith.constant 0 : index
    %29 = vector.load %arg6[%c0_14, %c0_15] : memref<1x128xf32, #tpu.memory_space<vmem>>, vector<1x128xf32>
    %30 = vector.broadcast %29 : vector<1x128xf32> to vector<16x128xf32>
    %31 = arith.addf %28, %30 : vector<16x128xf32>
    %c0_16 = arith.constant 0 : index
    %c0_17 = arith.constant 0 : index
    %32 = vector.load %arg7[%c0_16, %c0_17] : memref<16x128xf32, #tpu.memory_space<vmem>>, vector<16x128xf32>
    tpu.vector_store %arg7[%c0_16, %c0_17], %31 {strides = array<i32>} : memref<16x128xf32, #tpu.memory_space<vmem>>, vector<16x128xf32>,
    return
  }
  func.func @transform_0(%arg0: i32) -> (i32, i32) {
    %c0_i32 = arith.constant 0 : i32
    %c0_i32_0 = arith.constant 0 : i32
    return %arg0, %c0_i32 : i32, i32
  }
  func.func @transform_1(%arg0: i32) -> (i32, i32) {
    %c0_i32 = arith.constant 0 : i32
    %c0_i32_0 = arith.constant 0 : i32
    return %arg0, %c0_i32 : i32, i32
  }
  func.func @transform_2(%arg0: i32) -> (i32, i32) {
    %c0_i32 = arith.constant 0 : i32
    %c0_i32_0 = arith.constant 0 : i32
    %c0_i32_1 = arith.constant 0 : i32
    return %c0_i32, %c0_i32_0 : i32, i32
  }
  func.func @transform_3(%arg0: i32) -> (i32, i32) {
    %c0_i32 = arith.constant 0 : i32
    %c0_i32_0 = arith.constant 0 : i32
    %c0_i32_1 = arith.constant 0 : i32
    return %c0_i32, %c0_i32_0 : i32, i32
  }
  func.func @transform_4(%arg0: i32) -> (i32, i32) {
    %c0_i32 = arith.constant 0 : i32
    %c0_i32_0 = arith.constant 0 : i32
    %c0_i32_1 = arith.constant 0 : i32
    return %c0_i32, %c0_i32_0 : i32, i32
  }
  func.func @transform_5(%arg0: i32) -> (i32, i32) {
    %c0_i32 = arith.constant 0 : i32
    %c0_i32_0 = arith.constant 0 : i32
    %c0_i32_1 = arith.constant 0 : i32
    return %c0_i32, %c0_i32_0 : i32, i32
  }
  func.func @transform_6(%arg0: i32) -> (i32, i32) {
    %c0_i32 = arith.constant 0 : i32
    %c0_i32_0 = arith.constant 0 : i32
    return %arg0, %c0_i32 : i32, i32
  }
}

module attributes {stable_mosaic.version = 11 : i64} {
  func.func @ffn_add_ln_kernel(%arg0: i32, %arg1: memref<16x128xf32, #tpu.memory_space<vmem>>, %arg2: memref<128x128xf32, #tpu.memory_space<vmem>>, %arg3: memref<1x128xf32, #tpu.memory_space<vmem>>, %arg4: memref<128x128xf32, #tpu.memory_space<vmem>>, %arg5: memref<1x128xf32, #tpu.memory_space<vmem>>, %arg6: memref<1x128xf32, #tpu.memory_space<vmem>>, %arg7: memref<1x128xf32, #tpu.memory_space<vmem>>, %arg8: memref<16x128xf32, #tpu.memory_space<vmem>>) attributes {dimension_semantics = [#tpu.dimension_semantics<parallel>], iteration_bounds = array<i64: 1>, scalar_prefetch = 0 : i64, scratch_operands = 0 : i64, tpu.core_type = #tpu.core_type<tc>, window_params = [{transform_indices = @transform_0, window_bounds = array<i64: 16, 128>}, {pipeline_mode = #tpu.pipeline_mode<synchronous>, transform_indices = @transform_1, window_bounds = array<i64: 128, 128>}, {pipeline_mode = #tpu.pipeline_mode<synchronous>, transform_indices = @transform_2, window_bounds = array<i64: 1, 128>}, {pipeline_mode = #tpu.pipeline_mode<synchronous>, transform_indices = @transform_3, window_bounds = array<i64: 128, 128>}, {pipeline_mode = #tpu.pipeline_mode<synchronous>, transform_indices = @transform_4, window_bounds = array<i64: 1, 128>}, {pipeline_mode = #tpu.pipeline_mode<synchronous>, transform_indices = @transform_5, window_bounds = array<i64: 1, 128>}, {pipeline_mode = #tpu.pipeline_mode<synchronous>, transform_indices = @transform_6, window_bounds = array<i64: 1, 128>}, {transform_indices = @transform_7, window_bounds = array<i64: 16, 128>}]} {
    %c0 = arith.constant 0 : index
    %c0_0 = arith.constant 0 : index
    %0 = vector.load %arg1[%c0, %c0_0] : memref<16x128xf32, #tpu.memory_space<vmem>>, vector<16x128xf32>
    %c0_1 = arith.constant 0 : index
    %c0_2 = arith.constant 0 : index
    %1 = vector.load %arg2[%c0_1, %c0_2] : memref<128x128xf32, #tpu.memory_space<vmem>>, vector<128x128xf32>
    %cst = arith.constant dense<0.000000e+00> : vector<16x128xf32>
    %2 = tpu.matmul %0, %1, %cst {dimension_numbers = #tpu.dot_dimension_numbers<[1], [0], [0], [1], [0, 0, 1, 1], [], []>} : vector<16x128xf32>, vector<128x128xf32>, vector<16x128xf32> -> vector<16x128xf32>
    %c0_3 = arith.constant 0 : index
    %c0_4 = arith.constant 0 : index
    %3 = vector.load %arg3[%c0_3, %c0_4] : memref<1x128xf32, #tpu.memory_space<vmem>>, vector<1x128xf32>
    %4 = vector.broadcast %3 : vector<1x128xf32> to vector<16x128xf32>
    %5 = arith.addf %2, %4 : vector<16x128xf32>
    %cst_5 = arith.constant 5.000000e-01 : f32
    %6 = vector.broadcast %cst_5 : f32 to vector<16x128xf32>
    %7 = arith.mulf %6, %5 : vector<16x128xf32>
    %cst_6 = arith.constant 4.471500e-02 : f32
    %8 = vector.broadcast %cst_6 : f32 to vector<16x128xf32>
    %9 = arith.mulf %8, %5 : vector<16x128xf32>
    %10 = arith.mulf %9, %5 : vector<16x128xf32>
    %11 = arith.mulf %10, %5 : vector<16x128xf32>
    %12 = arith.addf %5, %11 : vector<16x128xf32>
    %cst_7 = arith.constant 0.797884583 : f32
    %13 = vector.broadcast %cst_7 : f32 to vector<16x128xf32>
    %14 = arith.mulf %13, %12 : vector<16x128xf32>
    %15 = math.tanh %14 : vector<16x128xf32>
    %cst_8 = arith.constant 1.000000e+00 : f32
    %16 = vector.broadcast %cst_8 : f32 to vector<16x128xf32>
    %17 = arith.addf %16, %15 : vector<16x128xf32>
    %18 = arith.mulf %7, %17 : vector<16x128xf32>
    %c0_9 = arith.constant 0 : index
    %c0_10 = arith.constant 0 : index
    %19 = vector.load %arg4[%c0_9, %c0_10] : memref<128x128xf32, #tpu.memory_space<vmem>>, vector<128x128xf32>
    %cst_11 = arith.constant dense<0.000000e+00> : vector<16x128xf32>
    %20 = tpu.matmul %18, %19, %cst_11 {dimension_numbers = #tpu.dot_dimension_numbers<[1], [0], [0], [1], [0, 0, 1, 1], [], []>} : vector<16x128xf32>, vector<128x128xf32>, vector<16x128xf32> -> vector<16x128xf32>
    %c0_12 = arith.constant 0 : index
    %c0_13 = arith.constant 0 : index
    %21 = vector.load %arg5[%c0_12, %c0_13] : memref<1x128xf32, #tpu.memory_space<vmem>>, vector<1x128xf32>
    %22 = vector.broadcast %21 : vector<1x128xf32> to vector<16x128xf32>
    %23 = arith.addf %20, %22 : vector<16x128xf32>
    %24 = arith.addf %23, %0 : vector<16x128xf32>
    %cst_14 = arith.constant dense<0.000000e+00> : vector<16xf32>
    %25 = vector.multi_reduction <add>, %24, %cst_14 [1] : vector<16x128xf32> to vector<16xf32>
    %26 = vector.shape_cast %25 : vector<16xf32> to vector<16x1xf32>
    %cst_15 = arith.constant 3.125000e-02 : f32
    %27 = vector.broadcast %cst_15 : f32 to vector<16x1xf32>
    %28 = arith.mulf %26, %27 : vector<16x1xf32>
    %29 = arith.mulf %24, %24 : vector<16x128xf32>
    %cst_16 = arith.constant dense<0.000000e+00> : vector<16xf32>
    %30 = vector.multi_reduction <add>, %29, %cst_16 [1] : vector<16x128xf32> to vector<16xf32>
    %31 = vector.shape_cast %30 : vector<16xf32> to vector<16x1xf32>
    %cst_17 = arith.constant 3.125000e-02 : f32
    %32 = vector.broadcast %cst_17 : f32 to vector<16x1xf32>
    %33 = arith.mulf %31, %32 : vector<16x1xf32>
    %34 = arith.mulf %28, %28 : vector<16x1xf32>
    %35 = arith.subf %33, %34 : vector<16x1xf32>
    %36 = vector.broadcast %28 : vector<16x1xf32> to vector<16x128xf32>
    %37 = arith.subf %24, %36 : vector<16x128xf32>
    %cst_18 = arith.constant 9.99999974E-6 : f32
    %38 = vector.broadcast %cst_18 : f32 to vector<16x1xf32>
    %39 = arith.addf %35, %38 : vector<16x1xf32>
    %40 = math.rsqrt %39 : vector<16x1xf32>
    %41 = vector.broadcast %40 : vector<16x1xf32> to vector<16x128xf32>
    %42 = arith.mulf %37, %41 : vector<16x128xf32>
    %c0_19 = arith.constant 0 : index
    %c0_20 = arith.constant 0 : index
    %43 = vector.load %arg6[%c0_19, %c0_20] : memref<1x128xf32, #tpu.memory_space<vmem>>, vector<1x128xf32>
    %44 = vector.broadcast %43 : vector<1x128xf32> to vector<16x128xf32>
    %45 = arith.mulf %42, %44 : vector<16x128xf32>
    %c0_21 = arith.constant 0 : index
    %c0_22 = arith.constant 0 : index
    %46 = vector.load %arg7[%c0_21, %c0_22] : memref<1x128xf32, #tpu.memory_space<vmem>>, vector<1x128xf32>
    %47 = vector.broadcast %46 : vector<1x128xf32> to vector<16x128xf32>
    %48 = arith.addf %45, %47 : vector<16x128xf32>
    %c0_23 = arith.constant 0 : index
    %c0_24 = arith.constant 0 : index
    %49 = vector.load %arg8[%c0_23, %c0_24] : memref<16x128xf32, #tpu.memory_space<vmem>>, vector<16x128xf32>
    tpu.vector_store %arg8[%c0_23, %c0_24], %48 {strides = array<i32>} : memref<16x128xf32, #tpu.memory_space<vmem>>, vector<16x128xf32>,
    return
  }
  func.func @transform_0(%arg0: i32) -> (i32, i32) {
    %c0_i32 = arith.constant 0 : i32
    %c0_i32_0 = arith.constant 0 : i32
    return %arg0, %c0_i32 : i32, i32
  }
  func.func @transform_1(%arg0: i32) -> (i32, i32) {
    %c0_i32 = arith.constant 0 : i32
    %c0_i32_0 = arith.constant 0 : i32
    %c0_i32_1 = arith.constant 0 : i32
    return %c0_i32, %c0_i32_0 : i32, i32
  }
  func.func @transform_2(%arg0: i32) -> (i32, i32) {
    %c0_i32 = arith.constant 0 : i32
    %c0_i32_0 = arith.constant 0 : i32
    %c0_i32_1 = arith.constant 0 : i32
    return %c0_i32, %c0_i32_0 : i32, i32
  }
  func.func @transform_3(%arg0: i32) -> (i32, i32) {
    %c0_i32 = arith.constant 0 : i32
    %c0_i32_0 = arith.constant 0 : i32
    %c0_i32_1 = arith.constant 0 : i32
    return %c0_i32, %c0_i32_0 : i32, i32
  }
  func.func @transform_4(%arg0: i32) -> (i32, i32) {
    %c0_i32 = arith.constant 0 : i32
    %c0_i32_0 = arith.constant 0 : i32
    %c0_i32_1 = arith.constant 0 : i32
    return %c0_i32, %c0_i32_0 : i32, i32
  }
  func.func @transform_5(%arg0: i32) -> (i32, i32) {
    %c0_i32 = arith.constant 0 : i32
    %c0_i32_0 = arith.constant 0 : i32
    %c0_i32_1 = arith.constant 0 : i32
    return %c0_i32, %c0_i32_0 : i32, i32
  }
  func.func @transform_6(%arg0: i32) -> (i32, i32) {
    %c0_i32 = arith.constant 0 : i32
    %c0_i32_0 = arith.constant 0 : i32
    %c0_i32_1 = arith.constant 0 : i32
    return %c0_i32, %c0_i32_0 : i32, i32
  }
  func.func @transform_7(%arg0: i32) -> (i32, i32) {
    %c0_i32 = arith.constant 0 : i32
    %c0_i32_0 = arith.constant 0 : i32
    return %arg0, %c0_i32 : i32, i32
  }
}

</mosaic_0001>

<bundles_post_ra>
// kernel: encoder_forward.4
= control target key start
LH: loop header
LB: loop body
LE: loop exit
PB: predicated region body
PF: predicated region fallthrough
CT: control target
= control target key end

     0   :  { %s379_s2 = inlined_call_operand.vmem [shape: f32[128,128], index: 2, kind: input, shape index: {}]   ;;  %s380_s0 = inlined_call_operand.vmem [shape: f32[16,128], index: 0, kind: input, shape index: {}]   ;;  %s381_s3 = inlined_call_operand.vmem [shape: f32[1,128], index: 3, kind: input, shape index: {}]   ;;  %s382_s1 = inlined_call_operand.vmem [shape: f32[16,128], index: 1, kind: input, shape index: {}]   ;;  %s383_s4 = inlined_call_operand.vmem [shape: f32[1,128], index: 4, kind: input, shape index: {}]   ;;  %s384_s5 = inlined_call_operand.vmem [shape: f32[1,128], index: 5, kind: input, shape index: {}]   ;;  %s385_s6 = inlined_call_operand.vmem [shape: f32[16,128], index: 6, kind: output, shape index: {}]  }
   0x1   :  { %v25_v0 = vld [vmem:[%s379_s2] sm:$0xff]  ;;  %v26_v1 = vld [vmem:[%s379_s2 + $0x8] sm:$0xff]  ;;  %v27_v2 = vld [vmem:[%s379_s2 + $0x10] sm:$0xff] }
   0x2   :  { %v233_v3 = vpack.c.bf16 %v26_v1, %v25_v0  ;;  %v28_v4 = vld [vmem:[%s379_s2 + $0x18] sm:$0xff]  ;;  %v29_v6 = vld [vmem:[%s379_s2 + $0x20] sm:$0xff]  ;;  %v30_v7 = vld [vmem:[%s379_s2 + $0x28] sm:$0xff] }
   0x3   :  { %v237_v5 = vpack.c.bf16 %v28_v4, %v27_v2  ;;  %v241_v8 = vpack.c.bf16 %v30_v7, %v29_v6  ;;  %v23_v9 = vld [vmem:[%s380_s0] sm:$0xff]  ;;  %v31_v10 = vld [vmem:[%s379_s2 + $0x30] sm:$0xff]  ;;  %v32_v11 = vld [vmem:[%s379_s2 + $0x38] sm:$0xff] }
   0x4   :  { %234 = vmatprep.subr.bf16.mxu0 %v233_v3  ;;  %230 = vmatprep.mubr.f32.mxu0 %v23_v9  ;;  %v245_v12 = vpack.c.bf16 %v32_v11, %v31_v10  ;;  %v33_v13 = vld [vmem:[%s379_s2 + $0x40] sm:$0xff]  ;;  %v34_v14 = vld [vmem:[%s379_s2 + $0x48] sm:$0xff]  ;;  %v35_v16 = vld [vmem:[%s379_s2 + $0x50] sm:$0xff] }
   0x5   :  { %236 = vmatpush3.bf16.msra.mxu0 %v233_v3  ;;  %v249_v15 = vpack.c.bf16 %v34_v14, %v33_v13  ;;  %v36_v17 = vld [vmem:[%s379_s2 + $0x58] sm:$0xff]  ;;  %v37_v19 = vld [vmem:[%s379_s2 + $0x60] sm:$0xff]  ;;  %v38_v20 = vld [vmem:[%s379_s2 + $0x68] sm:$0xff] }
   0x6   :  { %238 = vmatprep.subr.bf16.mxu0 %v237_v5  ;;  %v253_v18 = vpack.c.bf16 %v36_v17, %v35_v16  ;;  %v257_v21 = vpack.c.bf16 %v38_v20, %v37_v19  ;;  %v39_v22 = vld [vmem:[%s379_s2 + $0x70] sm:$0xff]  ;;  %v40_v23 = vld [vmem:[%s379_s2 + $0x78] sm:$0xff]  ;;  %v24_v25 = vld [vmem:[%s380_s0 + $0x8] sm:$0xff] }
   0x7   :  { %v261_v24 = vpack.c.bf16 %v40_v23, %v39_v22  ;;  %v177_v26 = vld [vmem:[%s381_s3] ss:$0 sm:$0xff]  ;;  %v124_v32 = vld [vmem:[%s382_s1 + $0x8] sm:$0xff] }
   0x8   :  { %v123_v29 = vld [vmem:[%s382_s1] sm:$0xff] }
   0x9   :  { %240 = vmatpush3.bf16.msra.mxu0 %v237_v5  ;;  %v178_v53 = vld [vmem:[%s383_s4] ss:$0 sm:$0xff] }
   0xa   :  { %242 = vmatprep.subr.bf16.mxu0 %v241_v8  ;;  %v179_v55 = vld [vmem:[%s384_s5] ss:$0 sm:$0xff] }
   0xd   :  { %244 = vmatpush3.bf16.msra.mxu0 %v241_v8 }
   0xe   :  { %246 = vmatprep.subr.bf16.mxu0 %v245_v12 }
  0x11   :  { %248 = vmatpush3.bf16.msra.mxu0 %v245_v12 }
  0x12   :  { %250 = vmatprep.subr.bf16.mxu0 %v249_v15 }
  0x15   :  { %252 = vmatpush3.bf16.msra.mxu0 %v249_v15 }
  0x16   :  { %254 = vmatprep.subr.bf16.mxu0 %v253_v18 }
  0x19   :  { %256 = vmatpush3.bf16.msra.mxu0 %v253_v18 }
  0x1a   :  { %258 = vmatprep.subr.bf16.mxu0 %v257_v21 }
  0x1d   :  { %260 = vmatpush3.bf16.msra.mxu0 %v257_v21 }
  0x1e   :  { %262 = vmatprep.subr.bf16.mxu0 %v261_v24 }
  0x21   :  { %264 = vmatpush3.bf16.msra.mxu0 %v261_v24 }
  0x24   :  { %231 = vmatmul.mubr.f32.vlgmr.msra.gmra.mrb[0].mxu0 %v24_v25 }
  0xf7   :  { %v232_v27 = vpop.f32.mrb[0].mxu0 }
  0xf8   :  { %v114_v28 = vpop.f32.mrb[1].mxu0  ;;  %v120_v30 = vadd.f32 %v232_v27, %v177_v26 }
  0xf9   :  { %v115_v31 = vadd.f32 %v177_v26, %v114_v28 }
  0xfa   :  { %v126_v34 = vadd.f32 %v124_v32, %v120_v30 }
  0xfb   :  { %v125_v33 = vadd.f32 %v123_v29, %v115_v31 }
  0xfc   :  { %v134_v36 = vmul.f32 %v126_v34, %v126_v34 }
  0xfd   :  { %127 = vadd.xlane.f32.xlu0 %v125_v33  ;;  %v133_v35 = vmul.f32 %v125_v33, %v125_v33 }
  0xff   :  { %135 = vadd.xlane.f32.xlu1 %v133_v35 }
 0x101   :  { %129 = vadd.xlane.f32.xlu0 %v126_v34 }
 0x103   :  { %137 = vadd.xlane.f32.xlu1 %v134_v36 }
 0x18a   :  { %v128_v37 = vpop.xlane.xlu0 %127 }
 0x18b   :  { %v131_v38 = vmul.f32 0.03125, %v128_v37 }
 0x18c   :  { %v136_v39 = vpop.xlane.xlu1 %135 }
 0x18d   :  { %v141_v40 = vmul.f32 %v131_v38, %v131_v38  ;;  %v139_v41 = vmul.f32 0.03125, %v136_v39  ;;  %v145_v51 = vsub.f32 %v125_v33, %v131_v38 }
 0x18e   :  { %v130_v42 = vpop.xlane.xlu0 %129 }
 0x18f   :  { %v143_v43 = vsub.f32 %v139_v41, %v141_v40  ;;  %v132_v44 = vmul.f32 0.03125, %v130_v42 }
 0x190   :  { %v138_v45 = vpop.xlane.xlu1 %137 }
 0x191   :  { %v147_v46 = vadd.f32 1e-05, %v143_v43  ;;  %v142_v47 = vmul.f32 %v132_v44, %v132_v44  ;;  %v140_v48 = vmul.f32 0.03125, %v138_v45  ;;  %v146_v57 = vsub.f32 %v126_v34, %v132_v44 }
 0x193   :  { %265 = vrsqrt.f32 %v147_v46  ;;  %v144_v49 = vsub.f32 %v140_v48, %v142_v47 }
 0x195   :  { %v148_v50 = vadd.f32 1e-05, %v144_v49 }
 0x197   :  { %267 = vrsqrt.f32 %v148_v50 }
 0x19d   :  { %v266_v52 = vpop.eup %265 }
 0x19e   :  { %v151_v54 = vmul.f32 %v266_v52, %v145_v51 }
 0x1a0   :  { %v160_v56 = vmul.f32 %v178_v53, %v151_v54 }
 0x1a1   :  { %v268_v58 = vpop.eup %267 }
 0x1a2   :  { %v169_v59 = vadd.f32 %v179_v55, %v160_v56  ;;  %v152_v60 = vmul.f32 %v268_v58, %v146_v57 }
 0x1a4   :  { %171 = vst [vmem:[%s385_s6] sm:$0xff] %v169_v59  ;;  %v161_v61 = vmul.f32 %v178_v53, %v152_v60 }
 0x1a6   :  { %v170_v62 = vadd.f32 %v179_v55, %v161_v61 }
 0x1a8   :  { %172 = vst [vmem:[%s385_s6 + $0x8] sm:$0xff] %v170_v62 }

// kernel: encoder_forward.3
= control target key start
LH: loop header
LB: loop body
LE: loop exit
PB: predicated region body
PF: predicated region fallthrough
CT: control target
= control target key end

     0   :  { %s1241_s15 = smov 0   ;;  %s1347_s0 = inlined_call_operand.vmem [shape: f32[2,8,32], index: 0, kind: input, shape index: {}]   ;;  %s1348_s1 = inlined_call_operand.vmem [shape: f32[32,96], index: 1, kind: input, shape index: {}]   ;;  %s1349_s2 = inlined_call_operand.vmem [shape: f32[1,96], index: 2, kind: input, shape index: {}]   ;;  %s1350_s3 = inlined_call_operand.vmem [shape: f32[2,1,8], index: 3, kind: input, shape index: {}]   ;;  %s1351_s4 = inlined_call_operand.vmem [shape: f32[2,8,32], index: 4, kind: output, shape index: {}]  }
   0x1 LB: > { %s1048_s16 = sadd.s32 4294967295, %s1197_s15   ;;  %p1052_p0 = scmp.ge.s32.totalorder %s1197_s15, 1  ;;  %s1197_s15 = sphi %s1241_s15, %s14_s15  }
   0x2   : > { %p169_p1 = scmp.lt.s32.totalorder %s1197_s15, 3 }
   0x4   : > { %p170_p2 = pnand %p1052_p0, %p169_p1 }
   0x5   : > { %v208_v0 = vld [vmem:[%s1348_s1] sm:$0xff] (!%p170_p2)  ;;  %v209_v1 = vld [vmem:[%s1348_s1 + $0x8] sm:$0xff] (!%p170_p2)  ;;  %v210_v2 = vld [vmem:[%s1348_s1 + $0x10] sm:$0xff] (!%p170_p2)  ;;  %v1199_v3 = vmov (!%p170_p2), 0.0|0.0   ;;  %vm1200_vm0 = vmmov (!%p170_p2), 0   ;;  %v1201_v6 = vmov (!%p170_p2), 0.0  }
   0x6   : > { %173 = sbr.rel (%p170_p2) target bundleno = 1265 (0x4f1), region = 36  ;;  %1144 = vmatprep.subr.bf16.mxu0 (!%p170_p2), %v1199_v3  ;;  %v1145_v4 = vpack.c.bf16 (!%p170_p2), %v209_v1, %v208_v0  ;;  %v211_v5 = vld [vmem:[%s1348_s1 + $0x18] sm:$0xff] (!%p170_p2)  ;;  %1101 = vmatprep.mubr.msk.f32.mxu0 (!%p170_p2), %vm1200_vm0, %v1201_v6  ;;  %p196_p3 = scmp.lt.s32.totalorder (!%p170_p2), %s1048_s16, 1  ;;  %vm219_vm1 = vcmask (!%p170_p2), 261120   ;;  %v1055_v9 = vld [vmem:[%s1349_s2] ss:$0 sm:$0xff] (!%p170_p2) }
   0x7   : > { %1104 = vmatprep.subr.mxu1 (!%p170_p2), %v1201_v6  ;;  %1106 = vmatprep.mubr.msk.f32.mxu1 (!%p170_p2), %vm1200_vm0, %v1201_v6  ;;  %v1148_v7 = vpack.c.bf16 (!%p170_p2), %v211_v5, %v210_v2  ;;  %s1202_s5 = smov (!%p170_p2), 120   ;;  %s1203_s6 = smov (!%p170_p2), 96   ;;  %vm297_vm2 = vcmask (!%p170_p2), 64512   ;;  %vm981_vm3 = vcmask (!%p170_p2), 130048   ;;  %vm983_vm4 = vcmask (!%p170_p2), 195584  }
   0x8   : > { %1146 = vmatpush3.bf16.msra.mxu0 (!%p170_p2), %v1145_v4  ;;  %s1204_s7 = smov (!%p170_p2), 80   ;;  %s1205_s8 = smov (!%p170_p2), 88  }
   0x9   : > { %1147 = vmatprep.subr.bf16.mxu0 (!%p170_p2), %v1199_v3  ;;  %s1206_s9 = smov (!%p170_p2), 72   ;;  %s1207_s10 = smov (!%p170_p2), 112  }
   0xa   : > { %s1208_s11 = smov (!%p170_p2), 104   ;;  %s1209_s17 = smov (!%p170_p2), 56  }
   0xb   : > { %s1210_s18 = smov (!%p170_p2), 64   ;;  %s1211_s19 = smov (!%p170_p2), 48  }
   0xc   : > { %1149 = vmatpush3.bf16.msra.mxu0 (!%p170_p2), %v1148_v7  ;;  %s1212_s20 = smov (!%p170_p2), 40   ;;  %s1213_s21 = smov (!%p170_p2), 8  }
   0xd   : > { %s1353_s16 = smov (!%p196_p3, %s1048_s16), 1  ;;  %1114 = vmatprep.subr.mxu0 %v1201_v6  ;;  %s1214_s22 = smov 16  }
   0xe   : > { %s1053_s25 = sshll.u32 %s1353_s16, 3  ;;  %s202_s14 = scalar_lea.vmem %s1350_s3, %s1353_s16 }
   0xf   : > { %s199_s28 = scalar_lea.vmem %s1347_s0, %s1053_s25  ;;  %v1059_v21 = vld [vmem:[%s202_s14] ss:$0 sm:$0xff]  ;;  %s1215_s23 = smov 24  }
  0x10   : > { %v207_v8 = vld [vmem:[%s199_s28] sm:$0xff]  ;;  %s206_s27 = scalar_lea.vmem %s1351_s4, %s1053_s25 }
  0x11   : > { %1102 = vmatmul.mubr.msk.f32.vlgmr.msra.gmra.mrb[0].mxu0 %vm219_vm1, %v207_v8 }
  0x12   : > { %1116 = vmatprep.mubr.msk.f32.mxu0 %vm1200_vm0, %v1201_v6 }
  0xe4   : > { %v289_v10 = vpop.f32.mrb[0].mxu0 }
  0xe5   : > { %v1281_v11 = vadd.f32 %v1055_v9, %v289_v10  ;;  %v1103_v12 = vpop.f32.mrb[1].mxu0 }
  0xe7   : > { %467 = vrot.lane.b32.xlu1 %v1281_v11, %s1202_s5  ;;  %295 = vrot.lane.b32.xlu0 %v1281_v11, %s1203_s6 }
  0xeb   : > { %636 = vrot.lane.b32.xlu1 %v1281_v11, %s1204_s7  ;;  %469 = vrot.lane.b32.xlu0 %v1281_v11, %s1205_s8 }
  0xef   : > { %803 = vrot.lane.b32.xlu1 %v1281_v11, %s1206_s9  ;;  %634 = vrot.lane.b32.xlu0 %v1281_v11, %s1207_s10 }
  0xf3   : > { %801 = vrot.lane.b32.xlu0 %v1281_v11, %s1208_s11 }
 0x159   : > { %v468_v13 = vpop.permute.xlu1 %467  ;;  %v296_v14 = vpop.permute.xlu0 %295 }
 0x15a   : > { %1105 = vmatpush3.xpose.msk.msra.mxu1 %vm297_vm2, %v296_v14 }
 0x15b   : > { %1109 = vmatprep.subr.mxu1 %v1201_v6 }
 0x15d   : > { %1107 = vmatmul.mubr.msk.f32.vlgmr.msra.gmra.mrb[0].mxu1 %vm297_vm2, %v1281_v11  ;;  %v470_v15 = vpop.permute.xlu0 %469  ;;  %v637_v16 = vpop.permute.xlu1 %636 }
 0x15e   : > { %1115 = vmatpush3.xpose.msk.msra.mxu0 %vm297_vm2, %v470_v15  ;;  %1111 = vmatprep.mubr.msk.f32.mxu1 %vm1200_vm0, %v1201_v6 }
 0x15f   : > { %1124 = vmatprep.subr.mxu0 %v1201_v6 }
 0x161   : > { %1117 = vmatmul.mubr.msk.f32.vlgmr.msra.gmra.mrb[2].mxu0 %vm297_vm2, %v468_v13  ;;  %v635_v17 = vpop.permute.xlu0 %634  ;;  %v804_v18 = vpop.permute.xlu1 %803 }
 0x162   : > { %1125 = vmatpush3.xpose.msk.msra.mxu0 %vm297_vm2, %v637_v16  ;;  %1126 = vmatprep.mubr.msk.f32.mxu0 %vm1200_vm0, %v1201_v6 }
 0x163   : > { %1134 = vmatprep.subr.mxu0 %v1201_v6 }
 0x165   : > { %1127 = vmatmul.mubr.msk.f32.vlgmr.msra.gmra.mrb[4].mxu0 %vm297_vm2, %v635_v17  ;;  %v802_v19 = vpop.permute.xlu0 %801 }
 0x166   : > { %1135 = vmatpush3.xpose.msk.msra.mxu0 %vm297_vm2, %v804_v18  ;;  %1136 = vmatprep.mubr.msk.f32.mxu0 %vm1200_vm0, %v1201_v6 }
 0x169   : > { %1137 = vmatmul.mubr.msk.f32.vlgmr.msra.gmra.mrb[6].mxu0 %vm297_vm2, %v802_v19 }
 0x230   : > { %v368_v20 = vpop.f32.mrb[0].mxu1 }
 0x231   : > { %v372_v22 = vmul.f32 0.35355338, %v368_v20  ;;  %v1108_v23 = vpop.f32.mrb[1].mxu1 }
 0x233   : > { %v379_v24 = vadd.f32 %v1059_v21, %v372_v22 }
 0x234   : > { %v541_v25 = vpop.f32.mrb[2].mxu0 }
 0x235   : > { %v545_v26 = vmul.f32 0.35355338, %v541_v25  ;;  %v1118_v27 = vpop.f32.mrb[3].mxu0  ;;  %v380_v28 = vsel %vm297_vm2, %v379_v24, -inf }
 0x236   : > { %381 = vmax.xlane.f32.xlu1 %v380_v28 }
 0x237   : > { %v546_v29 = vadd.f32 %v1059_v21, %v545_v26 }
 0x238   : > { %v708_v30 = vpop.f32.mrb[4].mxu0 }
 0x239   : > { %v712_v31 = vmul.f32 0.35355338, %v708_v30  ;;  %v1128_v32 = vpop.f32.mrb[5].mxu0  ;;  %v547_v33 = vsel %vm297_vm2, %v546_v29, -inf }
 0x23a   : > { %548 = vmax.xlane.f32.xlu0 %v547_v33 }
 0x23b   : > { %v713_v34 = vadd.f32 %v1059_v21, %v712_v31 }
 0x23c   : > { %v875_v35 = vpop.f32.mrb[6].mxu0 }
 0x23d   : > { %v879_v36 = vmul.f32 0.35355338, %v875_v35  ;;  %v1138_v37 = vpop.f32.mrb[7].mxu0  ;;  %v714_v38 = vsel %vm297_vm2, %v713_v34, -inf }
 0x23e   : > { %715 = vmax.xlane.f32.xlu0 %v714_v38 }
 0x23f   : > { %v880_v39 = vadd.f32 %v1059_v21, %v879_v36 }
 0x241   : > { %v881_v40 = vsel %vm297_vm2, %v880_v39, -inf }
 0x242   : > { %882 = vmax.xlane.f32.xlu1 %v881_v40 }
 0x253   : > { %558 = vrot.lane.b32.xlu1 %v1281_v11, %s1209_s17 }
 0x2c3   : > { %v382_v41 = vpop.xlane.xlu1 %381 }
 0x2c4   : > { %v383_v42 = vsub.f32 %v379_v24, %v382_v41 }
 0x2c6   : > { %v384_v43 = vmul.f32 1.442695, %v383_v42 }
 0x2c7   : > { %v549_v44 = vpop.xlane.xlu0 %548 }
 0x2c8   : > { %1175 = vpow2.f32 %v384_v43  ;;  %v550_v45 = vsub.f32 %v546_v29, %v549_v44 }
 0x2ca   : > { %v551_v46 = vmul.f32 1.442695, %v550_v45 }
 0x2cb   : > { %v716_v56 = vpop.xlane.xlu0 %715 }
 0x2cc   : > { %1177 = vpow2.f32 %v551_v46  ;;  %v717_v57 = vsub.f32 %v713_v34, %v716_v56 }
 0x2ce   : > { %v718_v58 = vmul.f32 1.442695, %v717_v57 }
 0x2cf   : > { %v883_v47 = vpop.xlane.xlu1 %882 }
 0x2d0   : > { %v884_v48 = vsub.f32 %v880_v39, %v883_v47 }
 0x2d2   : > { %v1176_v49 = vpop.eup %1175  ;;  %v885_v50 = vmul.f32 1.442695, %v884_v48 }
 0x2d3   : > { %v386_v51 = vsel %vm297_vm2, %v1176_v49, 0.0  ;;  %v559_v61 = vpop.permute.xlu1 %558 }
 0x2d4   : > { %1179 = vpow2.f32 %v885_v50  ;;  %387 = vadd.xlane.f32.xlu0 %v386_v51 }
 0x2d5   : > { %1181 = vpow2.f32 %v718_v58 }
 0x2d6   : > { %v1178_v52 = vpop.eup %1177 }
 0x2d7   : > { %v553_v53 = vsel %vm297_vm2, %v1178_v52, 0.0 }
 0x2d8   : > { %554 = vadd.xlane.f32.xlu1 %v553_v53 }
 0x2de   : > { %v1180_v54 = vpop.eup %1179 }
 0x2df   : > { %v887_v55 = vsel %vm297_vm2, %v1180_v54, 0.0  ;;  %v1182_v59 = vpop.eup %1181 }
 0x2e0   : > { %888 = vadd.xlane.f32.xlu1 %v887_v55  ;;  %v720_v60 = vsel %vm297_vm2, %v1182_v59, 0.0 }
 0x2ea   : > { %391 = vrot.lane.b32.xlu0 %v1281_v11, %s1210_s18 }
 0x2f1   : > { %725 = vrot.lane.b32.xlu1 %v1281_v11, %s1211_s19 }
 0x309   : > { %721 = vadd.xlane.f32.xlu0 %v720_v60 }
 0x31f   : > { %892 = vrot.lane.b32.xlu0 %v1281_v11, %s1212_s20 }
 0x361   : > { %v388_v62 = vpop.xlane.xlu0 %387 }
 0x362   : > { %1183 = vrcp.f32 %v388_v62 }
 0x365   : > { %v392_v63 = vpop.permute.xlu0 %391  ;;  %v555_v0 = vpop.xlane.xlu1 %554 }
 0x366   : > { %1185 = vrcp.f32 %v555_v0  ;;  %1110 = vmatpush3.msra.mxu1 %v392_v63 }
 0x367   : > { %1119 = vmatprep.subr.mxu1 %v1201_v6 }
 0x36c   : > { %v1184_v1 = vpop.eup %1183 }
 0x36d   : > { %v390_v2 = vmul.f32 %v1184_v1, %v1176_v49  ;;  %v889_v3 = vpop.xlane.xlu1 %888 }
 0x36f   : > { %1112 = vmatmul.mubr.msk.f32.vlgmr.msra.gmra.mrb[2].mxu1 %vm297_vm2, %v390_v2 }
 0x370   : > { %v1186_v4 = vpop.eup %1185  ;;  %1120 = vmatpush3.msra.mxu1 %v559_v61  ;;  %1121 = vmatprep.mubr.msk.f32.mxu1 %vm1200_vm0, %v1201_v6 }
 0x371   : > { %v557_v5 = vmul.f32 %v1186_v4, %v1178_v52  ;;  %v726_v7 = vpop.permute.xlu1 %725  ;;  %1129 = vmatprep.subr.mxu1 %v1201_v6 }
 0x373   : > { %1122 = vmatmul.mubr.msk.f32.vlgmr.msra.gmra.mrb[4].mxu1 %vm297_vm2, %v557_v5 }
 0x374   : > { %1130 = vmatpush3.msra.mxu1 %v726_v7  ;;  %1131 = vmatprep.mubr.msk.f32.mxu1 %vm1200_vm0, %v1201_v6 }
 0x375   : > { %1139 = vmatprep.subr.mxu1 %v1201_v6 }
 0x396   : > { %v722_v8 = vpop.xlane.xlu0 %721 }
 0x397   : > { %1187 = vrcp.f32 %v722_v8 }
 0x398   : > { %1189 = vrcp.f32 %v889_v3 }
 0x39a   : > { %v893_v12 = vpop.permute.xlu0 %892 }
 0x3a1   : > { %v1188_v9 = vpop.eup %1187 }
 0x3a2   : > { %v724_v10 = vmul.f32 %v1188_v9, %v1182_v59  ;;  %v1190_v11 = vpop.eup %1189 }
 0x3a3   : > { %v891_v13 = vmul.f32 %v1190_v11, %v1180_v54 }
 0x3a4   : > { %1132 = vmatmul.mubr.msk.f32.vlgmr.msra.gmra.mrb[6].mxu1 %vm297_vm2, %v724_v10 }
 0x3a5   : > { %1140 = vmatpush3.msra.mxu1 %v893_v12  ;;  %1141 = vmatprep.mubr.msk.f32.mxu1 %vm1200_vm0, %v1201_v6 }
 0x3a8   : > { %1142 = vmatmul.mubr.msk.f32.vlgmr.msra.gmra.mrb[8].mxu1 %vm297_vm2, %v891_v13 }
 0x442   : > { %v463_v14 = vpop.f32.mrb[2].mxu1 }
 0x443   : > { %v1113_v15 = vpop.f32.mrb[3].mxu1 }
 0x446   : > { %v630_v16 = vpop.f32.mrb[4].mxu1 }
 0x447   : > { %969 = vrot.lane.b32.xlu1 %v630_v16, %s1213_s21  ;;  %v1123_v17 = vpop.f32.mrb[5].mxu1 }
 0x477   : > { %v797_v18 = vpop.f32.mrb[6].mxu1 }
 0x478   : > { %973 = vrot.lane.b32.xlu0 %v797_v18, %s1214_s22  ;;  %v1133_v19 = vpop.f32.mrb[7].mxu1 }
 0x47b   : > { %v964_v20 = vpop.f32.mrb[8].mxu1 }
 0x47c   : > { %977 = vrot.lane.b32.xlu1 %v964_v20, %s1215_s23  ;;  %v1143_v21 = vpop.f32.mrb[9].mxu1 }
 0x4b9   : > { %v970_v22 = vpop.permute.xlu1 %969 }
 0x4ba   : > { %v980_v23 = vsel %vm297_vm2, %v463_v14, %v970_v22 }
 0x4ea   : > { %v974_v6 = vpop.permute.xlu0 %973 }
 0x4eb   : > { %v982_v24 = vsel %vm981_vm3, %v980_v23, %v974_v6 }
 0x4ee   : > { %v978_v25 = vpop.permute.xlu1 %977 }
 0x4ef   : > { %v984_v26 = vsel %vm983_vm4, %v982_v24, %v978_v25 }
 0x4f0   : > { %985 = vst.msk [vmem:[%s206_s27] sm:$0xff] %vm219_vm1, %v984_v26 }
 0x4f1 PF: > { %s14_s15 = sadd.s32 1, %s1197_s15  }
 0x4f2   : > { %p11_p4 = scmp.ge.s32.totalorder %s14_s15, 4  }
 0x4f4   :  { %13 = sbr.rel (!%p11_p4) target bundleno = 1 (0x1), region = 69 }

// kernel: encoder_forward.5
= control target key start
LH: loop header
LB: loop body
LE: loop exit
PB: predicated region body
PF: predicated region fallthrough
CT: control target
= control target key end

     0   :  { %s644_s1 = inlined_call_operand.vmem [shape: f32[128,128], index: 1, kind: input, shape index: {}]   ;;  %s645_s0 = inlined_call_operand.vmem [shape: f32[16,128], index: 0, kind: input, shape index: {}]   ;;  %s646_s3 = inlined_call_operand.vmem [shape: f32[128,128], index: 3, kind: input, shape index: {}]   ;;  %s647_s2 = inlined_call_operand.vmem [shape: f32[1,128], index: 2, kind: input, shape index: {}]   ;;  %s648_s4 = inlined_call_operand.vmem [shape: f32[1,128], index: 4, kind: input, shape index: {}]   ;;  %s649_s5 = inlined_call_operand.vmem [shape: f32[1,128], index: 5, kind: input, shape index: {}]   ;;  %s650_s6 = inlined_call_operand.vmem [shape: f32[1,128], index: 6, kind: input, shape index: {}]   ;;  %s651_s7 = inlined_call_operand.vmem [shape: f32[16,128], index: 7, kind: output, shape index: {}]  }
   0x1   :  { %v28_v0 = vld [vmem:[%s644_s1] sm:$0xff]  ;;  %v29_v1 = vld [vmem:[%s644_s1 + $0x8] sm:$0xff]  ;;  %v30_v2 = vld [vmem:[%s644_s1 + $0x10] sm:$0xff] }
   0x2   :  { %v404_v3 = vpack.c.bf16 %v29_v1, %v28_v0  ;;  %v31_v4 = vld [vmem:[%s644_s1 + $0x18] sm:$0xff]  ;;  %v32_v6 = vld [vmem:[%s644_s1 + $0x20] sm:$0xff]  ;;  %v33_v7 = vld [vmem:[%s644_s1 + $0x28] sm:$0xff] }
   0x3   :  { %v408_v5 = vpack.c.bf16 %v31_v4, %v30_v2  ;;  %v412_v8 = vpack.c.bf16 %v33_v7, %v32_v6  ;;  %v34_v9 = vld [vmem:[%s644_s1 + $0x30] sm:$0xff]  ;;  %v540_v10 = vld [vmem:[%s645_s0] sm:$0xff]  ;;  %v35_v11 = vld [vmem:[%s644_s1 + $0x38] sm:$0xff] }
   0x4   :  { %405 = vmatprep.subr.bf16.mxu0 %v404_v3  ;;  %366 = vmatprep.mubr.f32.mxu0 %v540_v10  ;;  %v144_v12 = vld [vmem:[%s646_s3] sm:$0xff]  ;;  %v145_v13 = vld [vmem:[%s646_s3 + $0x8] sm:$0xff]  ;;  %v416_v15 = vpack.c.bf16 %v35_v11, %v34_v9  ;;  %v38_v19 = vld [vmem:[%s644_s1 + $0x50] sm:$0xff] }
   0x5   :  { %407 = vmatpush3.bf16.msra.mxu0 %v404_v3  ;;  %v436_v14 = vpack.c.bf16 %v145_v13, %v144_v12  ;;  %v36_v16 = vld [vmem:[%s644_s1 + $0x40] sm:$0xff]  ;;  %v37_v17 = vld [vmem:[%s644_s1 + $0x48] sm:$0xff]  ;;  %v39_v20 = vld [vmem:[%s644_s1 + $0x58] sm:$0xff] }
   0x6   :  { %409 = vmatprep.subr.bf16.mxu0 %v408_v5  ;;  %v420_v18 = vpack.c.bf16 %v37_v17, %v36_v16  ;;  %v424_v21 = vpack.c.bf16 %v39_v20, %v38_v19  ;;  %v40_v22 = vld [vmem:[%s644_s1 + $0x60] sm:$0xff]  ;;  %v41_v23 = vld [vmem:[%s644_s1 + $0x68] sm:$0xff]  ;;  %v42_v25 = vld [vmem:[%s644_s1 + $0x70] sm:$0xff] }
   0x7   :  { %437 = vmatprep.subr.bf16.mxu1 %v436_v14  ;;  %v428_v24 = vpack.c.bf16 %v41_v23, %v40_v22  ;;  %v43_v26 = vld [vmem:[%s644_s1 + $0x78] sm:$0xff]  ;;  %v579_v28 = vld [vmem:[%s645_s0 + $0x8] sm:$0xff]  ;;  %v146_v29 = vld [vmem:[%s646_s3 + $0x10] sm:$0xff] }
   0x8   :  { %439 = vmatpush3.bf16.msra.mxu1 %v436_v14  ;;  %v432_v27 = vpack.c.bf16 %v43_v26, %v42_v25  ;;  %v147_v30 = vld [vmem:[%s646_s3 + $0x18] sm:$0xff]  ;;  %v148_v32 = vld [vmem:[%s646_s3 + $0x20] sm:$0xff]  ;;  %v149_v33 = vld [vmem:[%s646_s3 + $0x28] sm:$0xff] }
   0x9   :  { %411 = vmatpush3.bf16.msra.mxu0 %v408_v5  ;;  %v440_v31 = vpack.c.bf16 %v147_v30, %v146_v29  ;;  %v444_v34 = vpack.c.bf16 %v149_v33, %v148_v32  ;;  %v150_v35 = vld [vmem:[%s646_s3 + $0x30] sm:$0xff]  ;;  %v151_v36 = vld [vmem:[%s646_s3 + $0x38] sm:$0xff]  ;;  %v152_v37 = vld [vmem:[%s646_s3 + $0x40] sm:$0xff] }
   0xa   :  { %413 = vmatprep.subr.bf16.mxu0 %v412_v8  ;;  %v448_v38 = vpack.c.bf16 %v151_v36, %v150_v35  ;;  %v153_v39 = vld [vmem:[%s646_s3 + $0x48] sm:$0xff]  ;;  %v154_v41 = vld [vmem:[%s646_s3 + $0x50] sm:$0xff]  ;;  %v155_v42 = vld [vmem:[%s646_s3 + $0x58] sm:$0xff] }
   0xb   :  { %441 = vmatprep.subr.bf16.mxu1 %v440_v31  ;;  %v452_v40 = vpack.c.bf16 %v153_v39, %v152_v37  ;;  %v456_v43 = vpack.c.bf16 %v155_v42, %v154_v41  ;;  %v156_v44 = vld [vmem:[%s646_s3 + $0x60] sm:$0xff]  ;;  %v157_v45 = vld [vmem:[%s646_s3 + $0x68] sm:$0xff]  ;;  %v158_v47 = vld [vmem:[%s646_s3 + $0x70] sm:$0xff] }
   0xc   :  { %443 = vmatpush3.bf16.msra.mxu1 %v440_v31  ;;  %v460_v46 = vpack.c.bf16 %v157_v45, %v156_v44  ;;  %v159_v48 = vld [vmem:[%s646_s3 + $0x78] sm:$0xff]  ;;  %v294_v50 = vld [vmem:[%s647_s2] ss:$0 sm:$0xff] }
   0xd   :  { %415 = vmatpush3.bf16.msra.mxu0 %v412_v8  ;;  %445 = vmatprep.subr.bf16.mxu1 %v444_v34  ;;  %v464_v49 = vpack.c.bf16 %v159_v48, %v158_v47  ;;  %v295_v9 = vld [vmem:[%s648_s4] ss:$0 sm:$0xff] }
   0xe   :  { %417 = vmatprep.subr.bf16.mxu0 %v416_v15  ;;  %v297_v36 = vld [vmem:[%s650_s6] ss:$0 sm:$0xff] }
  0x10   :  { %447 = vmatpush3.bf16.msra.mxu1 %v444_v34  ;;  %v296_v34 = vld [vmem:[%s649_s5] ss:$0 sm:$0xff] }
  0x11   :  { %419 = vmatpush3.bf16.msra.mxu0 %v416_v15  ;;  %449 = vmatprep.subr.bf16.mxu1 %v448_v38 }
  0x12   :  { %421 = vmatprep.subr.bf16.mxu0 %v420_v18 }
  0x14   :  { %451 = vmatpush3.bf16.msra.mxu1 %v448_v38 }
  0x15   :  { %423 = vmatpush3.bf16.msra.mxu0 %v420_v18  ;;  %453 = vmatprep.subr.bf16.mxu1 %v452_v40 }
  0x16   :  { %425 = vmatprep.subr.bf16.mxu0 %v424_v21 }
  0x18   :  { %455 = vmatpush3.bf16.msra.mxu1 %v452_v40 }
  0x19   :  { %427 = vmatpush3.bf16.msra.mxu0 %v424_v21  ;;  %457 = vmatprep.subr.bf16.mxu1 %v456_v43 }
  0x1a   :  { %429 = vmatprep.subr.bf16.mxu0 %v428_v24 }
  0x1c   :  { %459 = vmatpush3.bf16.msra.mxu1 %v456_v43 }
  0x1d   :  { %431 = vmatpush3.bf16.msra.mxu0 %v428_v24  ;;  %461 = vmatprep.subr.bf16.mxu1 %v460_v46 }
  0x1e   :  { %433 = vmatprep.subr.bf16.mxu0 %v432_v27 }
  0x20   :  { %463 = vmatpush3.bf16.msra.mxu1 %v460_v46 }
  0x21   :  { %435 = vmatpush3.bf16.msra.mxu0 %v432_v27  ;;  %465 = vmatprep.subr.bf16.mxu1 %v464_v49 }
  0x24   :  { %367 = vmatmul.mubr.f32.vlgmr.msra.gmra.mrb[0].mxu0 %v579_v28  ;;  %467 = vmatpush3.bf16.msra.mxu1 %v464_v49 }
  0xf7   :  { %v368_v51 = vpop.f32.mrb[0].mxu0 }
  0xf8   :  { %v123_v52 = vadd.f32 %v368_v51, %v294_v50  ;;  %v117_v53 = vpop.f32.mrb[1].mxu0 }
  0xf9   :  { %v118_v54 = vadd.f32 %v294_v50, %v117_v53 }
  0xfa   :  { %v129_v55 = vmul.f32 0.044715, %v123_v52  ;;  %v127_v6 = vmul.f32 0.5, %v123_v52 }
  0xfb   :  { %v128_v56 = vmul.f32 0.044715, %v118_v54  ;;  %v126_v4 = vmul.f32 0.5, %v118_v54 }
  0xfc   :  { %v131_v57 = vmul.f32 %v129_v55, %v123_v52 }
  0xfd   :  { %v130_v58 = vmul.f32 %v128_v56, %v118_v54 }
  0xfe   :  { %v133_v59 = vmul.f32 %v131_v57, %v123_v52 }
  0xff   :  { %v132_v60 = vmul.f32 %v130_v58, %v118_v54 }
 0x100   :  { %v135_v61 = vadd.f32 %v133_v59, %v123_v52 }
 0x101   :  { %v134_v62 = vadd.f32 %v132_v60, %v118_v54 }
 0x102   :  { %v137_v63 = vmul.f32 0.7978846, %v135_v61 }
 0x103   :  { %v136_v0 = vmul.f32 0.7978846, %v134_v62 }
 0x104   :  { %468 = vtanh.f32 %v137_v63 }
 0x105   :  { %470 = vtanh.f32 %v136_v0 }
 0x10e   :  { %v469_v1 = vpop.eup %468 }
 0x10f   :  { %v471_v2 = vpop.eup %470  ;;  %v141_v3 = vadd.f32 1.0, %v469_v1 }
 0x110   :  { %v140_v5 = vadd.f32 1.0, %v471_v2 }
 0x111   :  { %v143_v8 = vmul.f32 %v141_v3, %v127_v6 }
 0x112   :  { %v142_v7 = vmul.f32 %v140_v5, %v126_v4 }
 0x114   :  { %401 = vmatprep.mubr.f32.mxu1 %v142_v7 }
 0x115   :  { %402 = vmatmul.mubr.f32.vlgmr.msra.gmra.mrb[0].mxu1 %v143_v8 }
 0x1e8   :  { %v403_v11 = vpop.f32.mrb[0].mxu1 }
 0x1e9   :  { %v233_v12 = vpop.f32.mrb[1].mxu1  ;;  %v239_v13 = vadd.f32 %v403_v11, %v295_v9 }
 0x1ea   :  { %v234_v14 = vadd.f32 %v295_v9, %v233_v12 }
 0x1eb   :  { %v243_v16 = vadd.f32 %v239_v13, %v579_v28 }
 0x1ec   :  { %v242_v15 = vadd.f32 %v234_v14, %v540_v10 }
 0x1ed   :  { %v251_v18 = vmul.f32 %v243_v16, %v243_v16 }
 0x1ee   :  { %244 = vadd.xlane.f32.xlu0 %v242_v15  ;;  %v250_v17 = vmul.f32 %v242_v15, %v242_v15 }
 0x1f0   :  { %252 = vadd.xlane.f32.xlu1 %v250_v17 }
 0x1f2   :  { %246 = vadd.xlane.f32.xlu0 %v243_v16 }
 0x1f4   :  { %254 = vadd.xlane.f32.xlu1 %v251_v18 }
 0x27b   :  { %v245_v19 = vpop.xlane.xlu0 %244 }
 0x27c   :  { %v248_v20 = vmul.f32 0.03125, %v245_v19 }
 0x27d   :  { %v253_v21 = vpop.xlane.xlu1 %252 }
 0x27e   :  { %v258_v22 = vmul.f32 %v248_v20, %v248_v20  ;;  %v256_v23 = vmul.f32 0.03125, %v253_v21  ;;  %v262_v32 = vsub.f32 %v242_v15, %v248_v20 }
 0x27f   :  { %v247_v24 = vpop.xlane.xlu0 %246 }
 0x280   :  { %v260_v25 = vsub.f32 %v256_v23, %v258_v22  ;;  %v249_v26 = vmul.f32 0.03125, %v247_v24 }
 0x281   :  { %v255_v27 = vpop.xlane.xlu1 %254 }
 0x282   :  { %v264_v29 = vadd.f32 1e-05, %v260_v25  ;;  %v259_v30 = vmul.f32 %v249_v26, %v249_v26  ;;  %v257_v10 = vmul.f32 0.03125, %v255_v27  ;;  %v263_v38 = vsub.f32 %v243_v16, %v249_v26 }
 0x284   :  { %472 = vrsqrt.f32 %v264_v29  ;;  %v261_v28 = vsub.f32 %v257_v10, %v259_v30 }
 0x286   :  { %v265_v31 = vadd.f32 1e-05, %v261_v28 }
 0x288   :  { %474 = vrsqrt.f32 %v265_v31 }
 0x28e   :  { %v473_v33 = vpop.eup %472 }
 0x28f   :  { %v268_v35 = vmul.f32 %v473_v33, %v262_v32 }
 0x291   :  { %v277_v37 = vmul.f32 %v296_v34, %v268_v35 }
 0x292   :  { %v475_v39 = vpop.eup %474 }
 0x293   :  { %v286_v40 = vadd.f32 %v297_v36, %v277_v37  ;;  %v269_v41 = vmul.f32 %v475_v39, %v263_v38 }
 0x295   :  { %288 = vst [vmem:[%s651_s7] sm:$0xff] %v286_v40  ;;  %v278_v42 = vmul.f32 %v296_v34, %v269_v41 }
 0x297   :  { %v287_v43 = vadd.f32 %v297_v36, %v278_v42 }
 0x299   :  { %289 = vst [vmem:[%s651_s7 + $0x8] sm:$0xff] %v287_v43 }

</bundles_post_ra>
